<compile_context>
chip_gen: v6e
topology: v6e:2x2x1
jax: 0.10.0
libtpu: 0.0.40
codegen_flags: <defaults>
</compile_context>

<pallas_src>
import functools

import jax
import jax.numpy as jnp
from jax.experimental import pallas as pl
from jax.experimental.pallas import tpu as pltpu

_LANE = 128


def _round_up(x, m):
    return (x + m - 1) // m * m


def _sublane_for(dtype):
    itemsize = jnp.dtype(dtype).itemsize
    if itemsize >= 4:
        return 8
    if itemsize == 2:
        return 16
    return 32


def _largest_aligned_divisor(total, unit, cap):
    """Largest multiple of `unit` that divides `total` and is <= cap (>= unit)."""
    best = unit
    d = unit
    limit = min(total, cap)
    while d <= limit:
        if total % d == 0:
            best = d
        d += unit
    return best


def _vmem_capacity_bytes():
    try:
        return int(pltpu.get_tpu_info().vmem_capacity_bytes)
    except Exception:
        return 64 * 1024 * 1024  # conservative (v7x-sized) fallback


_VMEM_CAP = _vmem_capacity_bytes()


# ----------------------------- kernels ------------------------------------ #

def _logreg_resident_kernel(x_ref, wt_ref, b_ref, o_ref):
    # Whole (ft_in, tc) W^T slab is VMEM-resident (constant index_map); single
    # MXU matmul with f32 accumulation + f32 bias add, written straight to the
    # output tile -- no scratch buffer, no extra VMEM read/write pass.
    o_ref[...] = (
        jnp.dot(x_ref[...], wt_ref[...], preferred_element_type=jnp.float32)
        + b_ref[...]
    ).astype(o_ref.dtype)


def _logreg_ktiled_kernel(x_ref, wt_ref, b_ref, o_ref, acc_ref):
    # Fallback when W^T does not fit VMEM: accumulate over the K grid axis.
    k = pl.program_id(2)

    @pl.when(k == 0)
    def _():
        acc_ref[...] = jnp.zeros_like(acc_ref)

    acc_ref[...] += jnp.dot(x_ref[...], wt_ref[...],
                            preferred_element_type=jnp.float32)

    @pl.when(k == pl.num_programs(2) - 1)
    def _():
        o_ref[...] = (acc_ref[...] + b_ref[...]).astype(o_ref.dtype)


# --------------------------- parameter prep -------------------------------- #

def prepare_logreg_params(weight, bias, operand_dtype=None):
    """One-time prep: W^T with the class dim zero-padded to a lane multiple.

    weight: (nb_classes, ft_in)  -- PyTorch nn.Linear layout
    bias:   (nb_classes,)
    The feature (K) dim is deliberately NOT padded so the activation never
    needs a wrapper-side pad/copy on the (common) resident-weight path.
    Pass operand_dtype=jnp.bfloat16 for the bandwidth-optimized path
    (accumulation / bias add stay f32; correctness tolerance is looser).
    Returns (wt: (ft_in, c_pad), bias: (1, c_pad) f32).
    """
    nb_classes, ft_in = weight.shape
    c_pad = _round_up(nb_classes, _LANE)
    w_dtype = operand_dtype if operand_dtype is not None else weight.dtype
    wt = jnp.zeros((ft_in, c_pad), w_dtype).at[:, :nb_classes].set(
        weight.T.astype(w_dtype))
    b = jnp.zeros((1, c_pad), jnp.float32).at[0, :nb_classes].set(
        bias.astype(jnp.float32))
    return wt, b


# ------------------------------ forward ------------------------------------ #

@functools.partial(jax.jit, static_argnames=("nb_classes",))
def logreg_forward(x, wt, b, *, nb_classes):
    """y = x @ W^T + b.   x: (N, ft_in); wt / b from prepare_logreg_params."""
    n, ft_in = x.shape
    k_dim, c_pad = wt.shape
    assert k_dim == ft_in, "weight/activation feature dims disagree"

    op_dtype = wt.dtype
    op_b = jnp.dtype(op_dtype).itemsize
    out_dtype = x.dtype
    out_b = jnp.dtype(out_dtype).itemsize
    sub = _sublane_for(op_dtype)

    x_op = x.astype(op_dtype)   # no-op on the default f32 path

    budget = max(16 * 1024 * 1024, int(0.6 * _VMEM_CAP))

    # Class-dim tile: single block for typical LogReg sizes; tiled only when
    # huge, so the working set never blows past v7x's smaller VMEM.
    tc = c_pad if c_pad <= 1024 else _largest_aligned_divisor(c_pad, _LANE, 1024)

    wt_tile_bytes = 2 * ft_in * tc * op_b            # conservative (2 buffers)
    resident = wt_tile_bytes <= budget // 2

    if resident:
        # ---------- resident-weight path: single K block, no scratch ----------
        row_bytes = 2 * ft_in * op_b + 2 * tc * out_b
        tm_fit = max(sub, (budget - wt_tile_bytes - 2 * tc * 4) // max(row_bytes, 1))
        tm = min(1024, _round_up(n, sub), (tm_fit // sub) * sub)
        tm = max(tm, sub)
        # Keep >= 2 parallel N steps so both v7x TensorCores get work.
        if pl.cdiv(n, tm) == 1 and n > sub:
            tm = max(sub, _round_up(pl.cdiv(n, 2), sub))

        grid = (c_pad // tc, pl.cdiv(n, tm))          # (C parallel, N parallel)

        ws = (wt_tile_bytes + 2 * tm * ft_in * op_b + 2 * tm * tc * out_b
              + 2 * tc * 4)
        vmem_limit = int(min(max(2 * ws, 32 * 1024 * 1024), 0.9 * _VMEM_CAP))

        cost = pl.CostEstimate(
            flops=2 * n * ft_in * c_pad,
            transcendentals=0,
            bytes_accessed=(n * ft_in * op_b + ft_in * c_pad * op_b
                            + c_pad * 4 + n * c_pad * out_b),
        )

        out = pl.pallas_call(
            _logreg_resident_kernel,
            out_shape=jax.ShapeDtypeStruct((n, c_pad), out_dtype),
            grid=grid,
            in_specs=[
                pl.BlockSpec((tm, ft_in), lambda c, i: (i, 0)),   # x: streams over N
                pl.BlockSpec((ft_in, tc), lambda c, i: (0, c)),   # W^T: VMEM-resident
                pl.BlockSpec((1, tc), lambda c, i: (0, c)),       # bias: resident
            ],
            out_specs=pl.BlockSpec((tm, tc), lambda c, i: (i, c)),
            compiler_params=pltpu.CompilerParams(
                dimension_semantics=("parallel", "parallel"),
                vmem_limit_bytes=vmem_limit,
            ),
            cost_estimate=cost,
        )(x_op, wt, b)
    else:
        # ---------- fallback: K-tiled reduction with f32 VMEM accumulator -----
        k_pad = _round_up(ft_in, _LANE)
        tk = k_pad if k_pad <= 1024 else _largest_aligned_divisor(k_pad, _LANE, 1024)
        tm = min(512, _round_up(n, sub))
        if k_pad != ft_in:                     # rare path; pads K only
            x_op = jnp.zeros((n, k_pad), op_dtype).at[:, :ft_in].set(x_op)
            wt = jnp.zeros((k_pad, c_pad), op_dtype).at[:ft_in, :].set(wt)

        grid = (c_pad // tc, pl.cdiv(n, tm), k_pad // tk)

        ws = (2 * tm * tk * op_b + 2 * tk * tc * op_b + 2 * tm * tc * out_b
              + tm * tc * 4 + 2 * tc * 4)
        vmem_limit = int(min(max(2 * ws, 32 * 1024 * 1024), 0.9 * _VMEM_CAP))

        out = pl.pallas_call(
            _logreg_ktiled_kernel,
            out_shape=jax.ShapeDtypeStruct((n, c_pad), out_dtype),
            grid=grid,
            in_specs=[
                pl.BlockSpec((tm, tk), lambda c, i, k: (i, k)),
                pl.BlockSpec((tk, tc), lambda c, i, k: (k, c)),
                pl.BlockSpec((1, tc), lambda c, i, k: (0, c)),
            ],
            out_specs=pl.BlockSpec((tm, tc), lambda c, i, k: (i, c)),
            scratch_shapes=[pltpu.VMEM((tm, tc), jnp.float32)],
            compiler_params=pltpu.CompilerParams(
                dimension_semantics=("parallel", "parallel", "arbitrary"),
                vmem_limit_bytes=vmem_limit,
            ),
        )(x_op, wt, b)

    return out[:, :nb_classes]


def xavier_uniform(key, shape, dtype=jnp.float32):
    # Matches torch.nn.init.xavier_uniform_ for a Linear weight (out, in).
    fan_out, fan_in = shape
    limit = jnp.sqrt(6.0 / (fan_in + fan_out))
    return jax.random.uniform(key, shape, dtype, minval=-limit, maxval=limit)


if __name__ == "__main__":
    key = jax.random.PRNGKey(0)
    k_x, k_w = jax.random.split(key)

    batch, ft_in, nb_classes = 16, 32, 8

    x = jax.random.normal(k_x, (batch, ft_in), dtype=jnp.float32)
    weight = xavier_uniform(k_w, (nb_classes, ft_in))     # like nn.Linear.weight
    bias = jnp.zeros((nb_classes,), dtype=jnp.float32)    # bias.data.fill_(0.0)

    # One-time parameter prep (transpose + class-dim lane padding).
    # Keep f32 operands here so the exact 1e-5 check below holds; pass
    # operand_dtype=jnp.bfloat16 for the bandwidth-optimized production path.
    wt_p, b_p = prepare_logreg_params(weight, bias)

    out = logreg_forward(x, wt_p, b_p, nb_classes=nb_classes)
    jax.block_until_ready(out)

    # Correctness check against plain-JAX reference.
    ref = x @ weight.T + bias
    assert out.shape == (batch, nb_classes)
    assert jnp.allclose(out, ref, atol=1e-5, rtol=1e-5)
    print("KERNEL_OK")
</pallas_src>

<mosaic_0001>
module attributes {stable_mosaic.version = 11 : i64} {
  func.func @_logreg_resident_kernel(%arg0: i32, %arg1: i32, %arg2: memref<8x32xf32, #tpu.memory_space<vmem>>, %arg3: memref<32x128xf32, #tpu.memory_space<vmem>>, %arg4: memref<1x128xf32, #tpu.memory_space<vmem>>, %arg5: memref<8x128xf32, #tpu.memory_space<vmem>>) attributes {dimension_semantics = [#tpu.dimension_semantics<parallel>, #tpu.dimension_semantics<parallel>], iteration_bounds = array<i64: 1, 2>, scalar_prefetch = 0 : i64, scratch_operands = 0 : i64, tpu.core_type = #tpu.core_type<tc>, window_params = [{transform_indices = @transform_0, window_bounds = array<i64: 8, 32>}, {transform_indices = @transform_1, window_bounds = array<i64: 32, 128>}, {transform_indices = @transform_2, window_bounds = array<i64: 1, 128>}, {transform_indices = @transform_3, window_bounds = array<i64: 8, 128>}]} {
    %c0 = arith.constant 0 : index
    %c0_0 = arith.constant 0 : index
    %0 = vector.load %arg2[%c0, %c0_0] : memref<8x32xf32, #tpu.memory_space<vmem>>, vector<8x32xf32>
    %c0_1 = arith.constant 0 : index
    %c0_2 = arith.constant 0 : index
    %1 = vector.load %arg3[%c0_1, %c0_2] : memref<32x128xf32, #tpu.memory_space<vmem>>, vector<32x128xf32>
    %cst = arith.constant dense<0.000000e+00> : vector<8x128xf32>
    %2 = tpu.matmul %0, %1, %cst {dimension_numbers = #tpu.dot_dimension_numbers<[1], [0], [0], [1], [0, 0, 1, 1], [], []>} : vector<8x32xf32>, vector<32x128xf32>, vector<8x128xf32> -> vector<8x128xf32>
    %c0_3 = arith.constant 0 : index
    %c0_4 = arith.constant 0 : index
    %3 = vector.load %arg4[%c0_3, %c0_4] : memref<1x128xf32, #tpu.memory_space<vmem>>, vector<1x128xf32>
    %4 = vector.broadcast %3 : vector<1x128xf32> to vector<8x128xf32>
    %5 = arith.addf %2, %4 : vector<8x128xf32>
    %c0_5 = arith.constant 0 : index
    %c0_6 = arith.constant 0 : index
    %6 = vector.load %arg5[%c0_5, %c0_6] : memref<8x128xf32, #tpu.memory_space<vmem>>, vector<8x128xf32>
    tpu.vector_store %arg5[%c0_5, %c0_6], %5 {strides = array<i32>} : memref<8x128xf32, #tpu.memory_space<vmem>>, vector<8x128xf32>,
    return
  }
  func.func @transform_0(%arg0: i32, %arg1: i32) -> (i32, i32) {
    %c0_i32 = arith.constant 0 : i32
    %c0_i32_0 = arith.constant 0 : i32
    return %arg1, %c0_i32 : i32, i32
  }
  func.func @transform_1(%arg0: i32, %arg1: i32) -> (i32, i32) {
    %c0_i32 = arith.constant 0 : i32
    %c0_i32_0 = arith.constant 0 : i32
    return %c0_i32, %arg0 : i32, i32
  }
  func.func @transform_2(%arg0: i32, %arg1: i32) -> (i32, i32) {
    %c0_i32 = arith.constant 0 : i32
    %c0_i32_0 = arith.constant 0 : i32
    return %c0_i32, %arg0 : i32, i32
  }
  func.func @transform_3(%arg0: i32, %arg1: i32) -> (i32, i32) {
    %c0_i32 = arith.constant 0 : i32
    return %arg1, %arg0 : i32, i32
  }
}

</mosaic_0001>

<bundles_post_ra>
// kernel: logreg_forward.1
= control target key start
LH: loop header
LB: loop body
LE: loop exit
PB: predicated region body
PF: predicated region fallthrough
CT: control target
= control target key end

     0   :  { %8 = vsyncpa [#allocation3], 0  ;;  %s798_s0 = inlined_call_operand.hbm [shape: f32[16,32], index: 0, kind: input, shape index: {}]   ;;  %s799_s1 = inlined_call_operand.hbm [shape: f32[32,128], index: 1, kind: input, shape index: {}]   ;;  %s800_s2 = inlined_call_operand.vmem [shape: f32[1,128], index: 2, kind: input, shape index: {}]   ;;  %s801_s3 = inlined_call_operand.vmem [shape: f32[16,128], index: 3, kind: output, shape index: {}]  }
   0x1   :  { %10 = vsyncpa [#allocation3 + $0x1], 0 }
   0x2   :  { %11 = vsyncpa [#allocation5], 0  ;;  %s674_s12 = smov 0   ;;  %s676_s13 = smov 0  }
   0x3   :  { %s678_s14 = smov 0   ;;  %s680_s15 = smov 0  }
   0x4   :  { %s682_s16 = smov 0   ;;  %s684_s17 = smov 0  }
   0x5 LB: > { %s436_s18 = sadd.s32 4294967295, %s646_s17   ;;  %p49_p0 = scmp.ne.s32.totalorder %s630_s13, %s626_s12  ;;  %s646_s17 = sphi %s684_s17, %s17_s17   ;;  %s642_s16 = sphi %s682_s16, %s811_s16   ;;  %s638_s15 = sphi %s680_s15, %s810_s15   ;;  %s634_s14 = sphi %s678_s14, %s809_s14   ;;  %s630_s13 = sphi %s676_s13, %s808_s13   ;;  %s626_s12 = sphi %s674_s12, %s807_s12  }
   0x6   : > { %p704_p1 = scmp.eq.s32.totalorder %s436_s18, 0  ;;  %p438_p2 = scmp.ge.s32.totalorder %s646_s17, 1 }
   0x7   : > { %p140_p3 = scmp.lt.s32.totalorder %s646_s17, 3  ;;  %s648_s22 = smov [#allocation4]  }
   0x8   : > { %p712_p4 = por %p704_p1, %p49_p0  ;;  %s154_s23 = sshll.u32 %s648_s22, 4  ;;  %s155_s23 = int_to_ptr.vmem [resolvable:$true] %s154_s23 }
   0x9   : > { %p716_p5 = pnand %p438_p2, %p140_p3  ;;  %s26_s25 = sadd.s32 1, %s642_s16 }
   0xa   : > { %s549_s26 = scalar_lea.vmem %s155_s23, 512  ;;  %p557_p12 = scmp.lt.s32.totalorder %s155_s23, %s155_s23 }
   0xb   : > { %p474_p6 = pneg %p716_p5  ;;  %p550_p9 = scmp.ne.s32.totalorder %s155_s23, %s549_s26 }
   0xc   : > { %p558_p13 = scmp.lt.s32.totalorder %s549_s26, %s549_s26 }
   0xd   : > { %p724_p7 = pnand %p474_p6, %p704_p1 }
   0xe   : > { %p559_p0 = por %p558_p13, %p557_p12 }
   0xf   : > { %p540_p8 = pneg %p724_p7 }
  0x11   : > { %p552_p10 = pnand %p550_p9, %p540_p8 }
  0x13   : > { %p553_p11 = pneg %p552_p10 }
  0x15   : > { %p560_p2 = pnand %p559_p0, %p553_p11 }
  0x17   : > { %563 = shalt.err (!%p560_p2)
}
  0x18   : > { %s649_s27 = smov 128   ;;  %s650_s28 = smov 8  }
  0x19   : > { %477 = dma.hbm_to_vmem [thread:$0]  (!%p724_p7), %s799_s1, 512, %s155_s23, [#allocation5], %s649_s27, %s649_s27, %s650_s28  }
  0x1a   : > { %p27_p3 = scmp.ge.s32.totalorder %s26_s25, 2  ;;  %s36_s4 = sadd.s32 1, %s634_s14 }
  0x1b   : > { %p43_p6 = scmp.ne.s32.totalorder %s634_s14, %s630_s13  ;;  %p44_p8 = scmp.eq.s32.totalorder %s646_s17, 0 }
  0x1c   : > { %s813_s25 = smov (%p27_p3, %s26_s25), 0  ;;  %p483_p10 = scmp.lt.s32.totalorder %s646_s17, 2 }
  0x1d   : > { %p45_p9 = por %p44_p8, %p43_p6  ;;  %s33_s5 = ssub.s32 %s642_s16, %s813_s25 }
  0x1e   : > { %s174_s6 = sand.u32 1, %s634_s14   ;;  %p34_p11 = scmp.eq.s32.totalorder %s33_s5, 0 }
  0x1f   : > { %s442_s7 = sshll.u32 %s174_s6, 3  ;;  %s443_s8 = sshll.u32 %s642_s16, 7 }
  0x20   : > { %s748_s9 = scalar_select %p34_p11, %s634_s14, %s36_s4  }
  0x21   : > { %s183_s12 = scalar_lea.hbm %s798_s0, %s443_s8  ;;  %s178_s18 = scalar_lea.vmem [#allocation2], %s442_s7 }
  0x22   : > { %s185_s22 = sshll.u32 %s178_s18, 4  ;;  %p753_p7 = pnand %p483_p10, %p45_p9  ;;  %s186_s22 = int_to_ptr.vmem [resolvable:$true] %s185_s22 }
  0x23   : > { %s175_s24 = scalar_lea.sflag [#allocation3], %s174_s6  ;;  %s577_s26 = scalar_lea.vmem %s186_s22, 128 }
  0x24   : > { %p566_p12 = pneg %p753_p7  ;;  %p578_p13 = scmp.ne.s32.totalorder %s186_s22, %s577_s26 }
  0x25   : > { %s651_s27 = smov [#allocation2]  }
  0x26   : > { %p580_p0 = pnand %p578_p13, %p566_p12  ;;  %s582_s28 = sshll.u32 %s651_s27, 4  ;;  %s583_s28 = int_to_ptr.vmem [resolvable:$false] %s582_s28 }
  0x27   : > { %s584_s29 = scalar_lea.vmem %s583_s28, 256  ;;  %p585_p3 = scmp.lt.s32.totalorder %s186_s22, %s583_s28 }
  0x28   : > { %p581_p2 = pneg %p580_p0  ;;  %p586_p6 = scmp.lt.s32.totalorder %s584_s29, %s577_s26 }
  0x2a   : > { %p587_p8 = por %p586_p6, %p585_p3 }
  0x2c   : > { %p588_p9 = pnand %p587_p8, %p581_p2 }
  0x2e   : > { %591 = shalt.err (!%p588_p9)
}
  0x2f   : > { %481 = dma.hbm_to_vmem [thread:$0]  (!%p753_p7), %s183_s12, 128, %s186_s22, %s175_s24  }
  0x30   : > { %194 = sbr.rel (%p716_p5) target bundleno = 261 (0x105), region = 32  ;;  %s196_s30 = sand.u32 (!%p716_p5), 1, %s630_s13  }
  0x31   : > { %s445_s4 = sshll.u32 (!%p716_p5), %s196_s30, 3  ;;  %s197_s5 = scalar_lea.sflag (!%p716_p5), [#allocation3], %s196_s30 }
  0x32   : > { %s200_s6 = scalar_lea.vmem (!%p716_p5), [#allocation2], %s445_s4 }
  0x35   : > { %617 = dma.done.wait (%p712_p4), %s197_s5, 128  }
  0x36   : > { %619 = vsyncadd (%p712_p4), %s197_s5, 4294967168 }
  0x37   : > { %621 = dma.done.wait (%p704_p1), [#allocation5], 512  }
  0x38   : > { %623 = vsyncadd (%p704_p1), [#allocation5], 4294966784  ;;  %v652_v0 = vmov 0.0   ;;  %vm653_vm0 = vmmov 0   ;;  %v246_v1 = vld [vmem:[#allocation4 + $0x18] sm:$0xff]  ;;  %v245_v2 = vld [vmem:[#allocation4 + $0x10] sm:$0xff] }
  0x39   : > { %457 = vmatprep.subr.mxu0 %v652_v0  ;;  %465 = vmatprep.mubr.msk.f32.mxu0 %vm653_vm0, %v652_v0  ;;  %v244_v3 = vld [vmem:[#allocation4 + $0x8] sm:$0xff]  ;;  %v243_v4 = vld [vmem:[#allocation4] sm:$0xff]  ;;  %v242_v5 = vld [vmem:[%s200_s6] sm:$0xff]  ;;  %vm254_vm1 = vcmask 261120   ;;  %p235_p1 = scmp.lt.s32.totalorder %s638_s15, 1 }
  0x3a   : > { %458 = vmatpush3.msra.mxu0 %v246_v1  ;;  %v448_v6 = vld [vmem:[%s800_s2] ss:$0 sm:$0xff] }
  0x3b   : > { %459 = vmatprep.subr.mxu0 %v652_v0  ;;  %s815_s15 = smov (!%p235_p1, %s638_s15), 1 }
  0x3c   : > { %460 = vmatpush3.msra.mxu0 %v245_v2  ;;  %s447_s19 = sshll.u32 %s815_s15, 3 }
  0x3d   : > { %461 = vmatprep.subr.mxu0 %v652_v0  ;;  %s241_s10 = scalar_lea.vmem %s801_s3, %s447_s19 }
  0x3e   : > { %462 = vmatpush3.msra.mxu0 %v244_v3 }
  0x3f   : > { %463 = vmatprep.subr.mxu0 %v652_v0 }
  0x40   : > { %464 = vmatpush3.msra.mxu0 %v243_v4 }
  0x41   : > { %466 = vmatmul.mubr.msk.f32.vlgmr.msra.gmra.mxu0 %vm254_vm1, %v242_v5 }
 0x101   : > { %v324_v7 = vpop.f32.mrf.mxu0 }
 0x102   : > { %v325_v8 = vadd.f32 %v448_v6, %v324_v7 }
 0x103   : > { %v467_v9 = vpop.f32.mrf.mxu0 }
 0x104   : > { %328 = vst [vmem:[%s241_s10] sm:$0xff] %v325_v8 }
 0x105 PF: > { %s17_s17 = sadd.s32 1, %s646_s17   ;;  %s807_s12 = smov %s630_s13 }
 0x106   : > { %p14_p4 = scmp.ge.s32.totalorder %s17_s17, 4   ;;  %s808_s13 = smov %s634_s14 }
 0x107   : > { %s809_s14 = smov %s748_s9  ;;  %s810_s15 = smov %s642_s16 }
 0x108   : > { %s811_s16 = smov %s813_s25  ;;  %16 = sbr.rel (!%p14_p4) target bundleno = 5 (0x5), region = 80 }
 0x10d   :  { %354 = vsyncpa [#allocation3], 1 }
 0x10e   :  { %356 = vsyncpa [#allocation3 + $0x1], 1 }
 0x10f   :  { %357 = vsyncpa [#allocation5], 1 }

</bundles_post_ra>
